<compile_context>
chip_gen: v6e
topology: v6e:2x2x1
jax: 0.10.0
libtpu: 0.0.40
codegen_flags: <defaults>
</compile_context>

<pallas_src>
import functools

import jax
import jax.numpy as jnp
from jax.experimental import pallas as pl
from jax.experimental.pallas import tpu as pltpu

_EPS = 1e-5
_PAD = 3                      # halo of the largest kernel (k = 7)
_NPARAM = 24                  # packed parameter columns per channel
# packed columns: w3 -> 0:3, w5 -> 3:8, w7 -> 8:15, g/b pairs -> 16..21
_WCOL = {3: 0, 5: 3, 7: 8}
_GCOL = {3: 16, 5: 18, 7: 20}
_BCOL = {3: 17, 5: 19, 7: 21}


def tcn1d_kernel(x_ref, p_ref, out_ref):
    x = x_ref[...].astype(jnp.float32)            # (B, TC, L)
    p = p_ref[...].astype(jnp.float32)            # (TC, _NPARAM)
    L = x.shape[-1]

    lane = jax.lax.broadcasted_iota(jnp.int32, (1, 1, L), 2)

    # The 7 distinct shifted views x[..., i + s] (zero outside [0, L)),
    # computed once via XLU rotates + lane masks and shared by all branches.
    shifted = {0: x}
    for s in range(1, _PAD + 1):
        r = pltpu.roll(x, shift=(L - s) % L, axis=2)   # r[i] = x[(i + s) % L]
        shifted[s] = jnp.where(lane < L - s, r, 0.0)
        r = pltpu.roll(x, shift=s, axis=2)             # r[i] = x[(i - s) % L]
        shifted[-s] = jnp.where(lane >= s, r, 0.0)

    def dwconv(k):
        pad = (k - 1) // 2
        col = _WCOL[k]
        acc = p[:, col:col + 1] * shifted[-pad]        # first tap initializes
        for j in range(1, k):                          # static unroll
            acc = acc + p[:, col + j:col + j + 1] * shifted[j - pad]
        return acc

    def bn_relu(y, k):
        # Training-mode BatchNorm1d: biased stats over (batch, length) per
        # channel.  Exact per grid block because only C is tiled.
        mean = jnp.mean(y, axis=(0, 2), keepdims=True)          # (1, TC, 1)
        d = y - mean
        var = jnp.mean(d * d, axis=(0, 2), keepdims=True)
        inv = jax.lax.rsqrt(var + _EPS)
        g = p[:, _GCOL[k]:_GCOL[k] + 1]
        b = p[:, _BCOL[k]:_BCOL[k] + 1]
        return jnp.maximum(g * (d * inv) + b, 0.0)

    y = bn_relu(dwconv(3), 3)
    y = y + bn_relu(dwconv(5), 5)
    y = y + bn_relu(dwconv(7), 7)

    out_ref[...] = (x + y * (1.0 / 3.0)).astype(out_ref.dtype)


def _pick_channel_tile(B, C, L, max_channel_tile):
    """Channel tile: multiple of 8 (f32 sublane) dividing C, sized so ~12 live
    f32 (B, TC, L) slabs (2x double-buffered inputs, 2x outputs, 7 shifted
    views + temporaries) stay within ~24 MiB -> fits v7x's 64 MiB VMEM with
    headroom (and trivially fits v5e/v6e)."""
    budget = 24 * 1024 * 1024
    per_ch = 12 * B * L * 4
    tc = max(1, budget // per_ch)
    tc = min(tc, max_channel_tile, C)
    if tc >= C:
        return C
    tc = max(8, (tc // 8) * 8)
    while tc > 8 and C % tc != 0:
        tc -= 8
    return tc if C % tc == 0 else C


@functools.partial(jax.jit, static_argnames=("max_channel_tile",))
def tcn1d_forward(x, params, *, max_channel_tile=1024):
    B, C, L = x.shape
    assert params.shape == (C, _NPARAM)
    tc = _pick_channel_tile(B, C, L, max_channel_tile)
    grid = (C // tc,)

    return pl.pallas_call(
        tcn1d_kernel,
        out_shape=jax.ShapeDtypeStruct((B, C, L), x.dtype),
        grid=grid,
        in_specs=[
            pl.BlockSpec((B, tc, L), lambda c: (0, c, 0)),
            pl.BlockSpec((tc, _NPARAM), lambda c: (c, 0)),
        ],
        out_specs=pl.BlockSpec((B, tc, L), lambda c: (0, c, 0)),
        compiler_params=pltpu.CompilerParams(
            dimension_semantics=("parallel",),       # megacore on v7x
            vmem_limit_bytes=48 * 1024 * 1024,
        ),
    )(x, params)


def init_params(key, C):
    """Deterministic init mirroring weights_init(): conv kaiming_normal
    fan_out (bias 0, omitted), BN weight ~ N(1, 0.02), BN bias 0 — packed
    into a single (C, _NPARAM) array."""
    ks = jax.random.split(key, 6)
    P = jnp.zeros((C, _NPARAM), jnp.float32)
    for i, k in enumerate((3, 5, 7)):
        std = (2.0 / (C * k)) ** 0.5          # fan_out = out_channels * k
        w = std * jax.random.normal(ks[i], (C, k), jnp.float32)
        g = 1.0 + 0.02 * jax.random.normal(ks[3 + i], (C,), jnp.float32)
        P = P.at[:, _WCOL[k]:_WCOL[k] + k].set(w)
        P = P.at[:, _GCOL[k]].set(g)
        # beta columns stay 0
    return P


def tcn1d_reference(x, P):
    """Pure-JAX reference (same training-mode BN semantics)."""
    L = x.shape[-1]

    def branch(k):
        pad = (k - 1) // 2
        xp = jnp.pad(x, ((0, 0), (0, 0), (pad, pad)))
        y = sum(P[:, _WCOL[k] + j][None, :, None] * xp[:, :, j:j + L]
                for j in range(k))
        mean = y.mean(axis=(0, 2), keepdims=True)
        var = ((y - mean) ** 2).mean(axis=(0, 2), keepdims=True)
        yhat = (y - mean) / jnp.sqrt(var + _EPS)
        g = P[:, _GCOL[k]][None, :, None]
        b = P[:, _BCOL[k]][None, :, None]
        return jnp.maximum(g * yhat + b, 0.0)

    return x + (branch(3) + branch(5) + branch(7)) / 3.0


if __name__ == "__main__":
    key = jax.random.PRNGKey(0)
    kx, kp = jax.random.split(key)

    # (batch, feature_num, seq_len): L lane-dense (multiple of 128);
    # max_channel_tile=8 makes the demo exercise a 2-step "parallel" grid.
    B, C, L = 2, 16, 128
    x = jax.random.normal(kx, (B, C, L), jnp.float32)
    P = init_params(kp, C)

    out = tcn1d_forward(x, P, max_channel_tile=8)
    jax.block_until_ready(out)
    assert out.shape == (B, C, L) and out.dtype == x.dtype

    ref = tcn1d_reference(x, P)
    err = float(jnp.max(jnp.abs(out - ref)))
    assert jnp.allclose(out, ref, rtol=1e-3, atol=1e-4), err
    print("KERNEL_OK")
</pallas_src>

<mosaic_0001>
module attributes {stable_mosaic.version = 11 : i64} {
  func.func @tcn1d_kernel(%arg0: i32, %arg1: memref<2x8x128xf32, #tpu.memory_space<vmem>>, %arg2: memref<8x24xf32, #tpu.memory_space<vmem>>, %arg3: memref<2x8x128xf32, #tpu.memory_space<vmem>>) attributes {dimension_semantics = [#tpu.dimension_semantics<parallel>], iteration_bounds = array<i64: 2>, scalar_prefetch = 0 : i64, scratch_operands = 0 : i64, tpu.core_type = #tpu.core_type<tc>, window_params = [{transform_indices = @transform_0, window_bounds = array<i64: 2, 8, 128>}, {transform_indices = @transform_1, window_bounds = array<i64: 8, 24>}, {transform_indices = @transform_2, window_bounds = array<i64: 2, 8, 128>}]} {
    %c0 = arith.constant 0 : index
    %c0_0 = arith.constant 0 : index
    %c0_1 = arith.constant 0 : index
    %0 = vector.load %arg1[%c0, %c0_0, %c0_1] : memref<2x8x128xf32, #tpu.memory_space<vmem>>, vector<2x8x128xf32>
    %c0_2 = arith.constant 0 : index
    %c0_3 = arith.constant 0 : index
    %1 = vector.load %arg2[%c0_2, %c0_3] : memref<8x24xf32, #tpu.memory_space<vmem>>, vector<8x24xf32>
    %2 = tpu.iota {dimensions = array<i32: 2>} : vector<1x1x128xi32>
    %c127_i32 = arith.constant 127 : i32
    %3 = tpu.dynamic_rotate %0 by %c127_i32 dim 2 : vector<2x8x128xf32>, i32 -> vector<2x8x128xf32>
    %c127_i32_4 = arith.constant 127 : i32
    %4 = vector.broadcast %c127_i32_4 : i32 to vector<1x1x128xi32>
    %5 = arith.cmpi slt, %2, %4 : vector<1x1x128xi32>
    %cst = arith.constant 0.000000e+00 : f32
    %6 = vector.shape_cast %5 : vector<1x1x128xi1> to vector<1x1x128xi1>
    %7 = vector.broadcast %6 : vector<1x1x128xi1> to vector<2x8x128xi1>
    %8 = vector.broadcast %cst : f32 to vector<2x8x128xf32>
    %9 = arith.select %7, %3, %8 : vector<2x8x128xi1>, vector<2x8x128xf32>
    %c1_i32 = arith.constant 1 : i32
    %10 = tpu.dynamic_rotate %0 by %c1_i32 dim 2 : vector<2x8x128xf32>, i32 -> vector<2x8x128xf32>
    %c1_i32_5 = arith.constant 1 : i32
    %11 = vector.broadcast %c1_i32_5 : i32 to vector<1x1x128xi32>
    %12 = arith.cmpi sge, %2, %11 : vector<1x1x128xi32>
    %cst_6 = arith.constant 0.000000e+00 : f32
    %13 = vector.shape_cast %12 : vector<1x1x128xi1> to vector<1x1x128xi1>
    %14 = vector.broadcast %13 : vector<1x1x128xi1> to vector<2x8x128xi1>
    %15 = vector.broadcast %cst_6 : f32 to vector<2x8x128xf32>
    %16 = arith.select %14, %10, %15 : vector<2x8x128xi1>, vector<2x8x128xf32>
    %c126_i32 = arith.constant 126 : i32
    %17 = tpu.dynamic_rotate %0 by %c126_i32 dim 2 : vector<2x8x128xf32>, i32 -> vector<2x8x128xf32>
    %c126_i32_7 = arith.constant 126 : i32
    %18 = vector.broadcast %c126_i32_7 : i32 to vector<1x1x128xi32>
    %19 = arith.cmpi slt, %2, %18 : vector<1x1x128xi32>
    %cst_8 = arith.constant 0.000000e+00 : f32
    %20 = vector.shape_cast %19 : vector<1x1x128xi1> to vector<1x1x128xi1>
    %21 = vector.broadcast %20 : vector<1x1x128xi1> to vector<2x8x128xi1>
    %22 = vector.broadcast %cst_8 : f32 to vector<2x8x128xf32>
    %23 = arith.select %21, %17, %22 : vector<2x8x128xi1>, vector<2x8x128xf32>
    %c2_i32 = arith.constant 2 : i32
    %24 = tpu.dynamic_rotate %0 by %c2_i32 dim 2 : vector<2x8x128xf32>, i32 -> vector<2x8x128xf32>
    %c2_i32_9 = arith.constant 2 : i32
    %25 = vector.broadcast %c2_i32_9 : i32 to vector<1x1x128xi32>
    %26 = arith.cmpi sge, %2, %25 : vector<1x1x128xi32>
    %cst_10 = arith.constant 0.000000e+00 : f32
    %27 = vector.shape_cast %26 : vector<1x1x128xi1> to vector<1x1x128xi1>
    %28 = vector.broadcast %27 : vector<1x1x128xi1> to vector<2x8x128xi1>
    %29 = vector.broadcast %cst_10 : f32 to vector<2x8x128xf32>
    %30 = arith.select %28, %24, %29 : vector<2x8x128xi1>, vector<2x8x128xf32>
    %c125_i32 = arith.constant 125 : i32
    %31 = tpu.dynamic_rotate %0 by %c125_i32 dim 2 : vector<2x8x128xf32>, i32 -> vector<2x8x128xf32>
    %c125_i32_11 = arith.constant 125 : i32
    %32 = vector.broadcast %c125_i32_11 : i32 to vector<1x1x128xi32>
    %33 = arith.cmpi slt, %2, %32 : vector<1x1x128xi32>
    %cst_12 = arith.constant 0.000000e+00 : f32
    %34 = vector.shape_cast %33 : vector<1x1x128xi1> to vector<1x1x128xi1>
    %35 = vector.broadcast %34 : vector<1x1x128xi1> to vector<2x8x128xi1>
    %36 = vector.broadcast %cst_12 : f32 to vector<2x8x128xf32>
    %37 = arith.select %35, %31, %36 : vector<2x8x128xi1>, vector<2x8x128xf32>
    %c3_i32 = arith.constant 3 : i32
    %38 = tpu.dynamic_rotate %0 by %c3_i32 dim 2 : vector<2x8x128xf32>, i32 -> vector<2x8x128xf32>
    %c3_i32_13 = arith.constant 3 : i32
    %39 = vector.broadcast %c3_i32_13 : i32 to vector<1x1x128xi32>
    %40 = arith.cmpi sge, %2, %39 : vector<1x1x128xi32>
    %cst_14 = arith.constant 0.000000e+00 : f32
    %41 = vector.shape_cast %40 : vector<1x1x128xi1> to vector<1x1x128xi1>
    %42 = vector.broadcast %41 : vector<1x1x128xi1> to vector<2x8x128xi1>
    %43 = vector.broadcast %cst_14 : f32 to vector<2x8x128xf32>
    %44 = arith.select %42, %38, %43 : vector<2x8x128xi1>, vector<2x8x128xf32>
    %45 = vector.extract_strided_slice %1 {offsets = [0, 0], sizes = [8, 1], strides = [1, 1]} : vector<8x24xf32> to vector<8x1xf32>
    %46 = vector.shape_cast %45 : vector<8x1xf32> to vector<1x8x1xf32>
    %47 = vector.broadcast %46 : vector<1x8x1xf32> to vector<2x8x128xf32>
    %48 = arith.mulf %47, %16 : vector<2x8x128xf32>
    %49 = vector.extract_strided_slice %1 {offsets = [0, 1], sizes = [8, 1], strides = [1, 1]} : vector<8x24xf32> to vector<8x1xf32>
    %50 = vector.shape_cast %49 : vector<8x1xf32> to vector<1x8x1xf32>
    %51 = vector.broadcast %50 : vector<1x8x1xf32> to vector<2x8x128xf32>
    %52 = arith.mulf %51, %0 : vector<2x8x128xf32>
    %53 = arith.addf %48, %52 : vector<2x8x128xf32>
    %54 = vector.extract_strided_slice %1 {offsets = [0, 2], sizes = [8, 1], strides = [1, 1]} : vector<8x24xf32> to vector<8x1xf32>
    %55 = vector.shape_cast %54 : vector<8x1xf32> to vector<1x8x1xf32>
    %56 = vector.broadcast %55 : vector<1x8x1xf32> to vector<2x8x128xf32>
    %57 = arith.mulf %56, %9 : vector<2x8x128xf32>
    %58 = arith.addf %53, %57 : vector<2x8x128xf32>
    %cst_15 = arith.constant dense<0.000000e+00> : vector<8xf32>
    %59 = vector.multi_reduction <add>, %58, %cst_15 [0, 2] : vector<2x8x128xf32> to vector<8xf32>
    %60 = vector.shape_cast %59 : vector<8xf32> to vector<1x8x1xf32>
    %cst_16 = arith.constant 2.560000e+02 : f32
    %61 = vector.broadcast %cst_16 : f32 to vector<1x8x1xf32>
    %62 = arith.divf %60, %61 : vector<1x8x1xf32>
    %63 = vector.broadcast %62 : vector<1x8x1xf32> to vector<2x8x128xf32>
    %64 = arith.subf %58, %63 : vector<2x8x128xf32>
    %65 = arith.mulf %64, %64 : vector<2x8x128xf32>
    %cst_17 = arith.constant dense<0.000000e+00> : vector<8xf32>
    %66 = vector.multi_reduction <add>, %65, %cst_17 [0, 2] : vector<2x8x128xf32> to vector<8xf32>
    %67 = vector.shape_cast %66 : vector<8xf32> to vector<1x8x1xf32>
    %cst_18 = arith.constant 2.560000e+02 : f32
    %68 = vector.broadcast %cst_18 : f32 to vector<1x8x1xf32>
    %69 = arith.divf %67, %68 : vector<1x8x1xf32>
    %cst_19 = arith.constant 9.99999974E-6 : f32
    %70 = vector.broadcast %cst_19 : f32 to vector<1x8x1xf32>
    %71 = arith.addf %69, %70 : vector<1x8x1xf32>
    %72 = math.rsqrt %71 : vector<1x8x1xf32>
    %73 = vector.extract_strided_slice %1 {offsets = [0, 16], sizes = [8, 1], strides = [1, 1]} : vector<8x24xf32> to vector<8x1xf32>
    %74 = vector.extract_strided_slice %1 {offsets = [0, 17], sizes = [8, 1], strides = [1, 1]} : vector<8x24xf32> to vector<8x1xf32>
    %75 = vector.broadcast %72 : vector<1x8x1xf32> to vector<2x8x128xf32>
    %76 = arith.mulf %64, %75 : vector<2x8x128xf32>
    %77 = vector.shape_cast %73 : vector<8x1xf32> to vector<1x8x1xf32>
    %78 = vector.broadcast %77 : vector<1x8x1xf32> to vector<2x8x128xf32>
    %79 = arith.mulf %78, %76 : vector<2x8x128xf32>
    %80 = vector.shape_cast %74 : vector<8x1xf32> to vector<1x8x1xf32>
    %81 = vector.broadcast %80 : vector<1x8x1xf32> to vector<2x8x128xf32>
    %82 = arith.addf %79, %81 : vector<2x8x128xf32>
    %cst_20 = arith.constant 0.000000e+00 : f32
    %83 = vector.broadcast %cst_20 : f32 to vector<2x8x128xf32>
    %84 = arith.maximumf %82, %83 : vector<2x8x128xf32>
    %85 = vector.extract_strided_slice %1 {offsets = [0, 3], sizes = [8, 1], strides = [1, 1]} : vector<8x24xf32> to vector<8x1xf32>
    %86 = vector.shape_cast %85 : vector<8x1xf32> to vector<1x8x1xf32>
    %87 = vector.broadcast %86 : vector<1x8x1xf32> to vector<2x8x128xf32>
    %88 = arith.mulf %87, %30 : vector<2x8x128xf32>
    %89 = vector.extract_strided_slice %1 {offsets = [0, 4], sizes = [8, 1], strides = [1, 1]} : vector<8x24xf32> to vector<8x1xf32>
    %90 = vector.shape_cast %89 : vector<8x1xf32> to vector<1x8x1xf32>
    %91 = vector.broadcast %90 : vector<1x8x1xf32> to vector<2x8x128xf32>
    %92 = arith.mulf %91, %16 : vector<2x8x128xf32>
    %93 = arith.addf %88, %92 : vector<2x8x128xf32>
    %94 = vector.extract_strided_slice %1 {offsets = [0, 5], sizes = [8, 1], strides = [1, 1]} : vector<8x24xf32> to vector<8x1xf32>
    %95 = vector.shape_cast %94 : vector<8x1xf32> to vector<1x8x1xf32>
    %96 = vector.broadcast %95 : vector<1x8x1xf32> to vector<2x8x128xf32>
    %97 = arith.mulf %96, %0 : vector<2x8x128xf32>
    %98 = arith.addf %93, %97 : vector<2x8x128xf32>
    %99 = vector.extract_strided_slice %1 {offsets = [0, 6], sizes = [8, 1], strides = [1, 1]} : vector<8x24xf32> to vector<8x1xf32>
    %100 = vector.shape_cast %99 : vector<8x1xf32> to vector<1x8x1xf32>
    %101 = vector.broadcast %100 : vector<1x8x1xf32> to vector<2x8x128xf32>
    %102 = arith.mulf %101, %9 : vector<2x8x128xf32>
    %103 = arith.addf %98, %102 : vector<2x8x128xf32>
    %104 = vector.extract_strided_slice %1 {offsets = [0, 7], sizes = [8, 1], strides = [1, 1]} : vector<8x24xf32> to vector<8x1xf32>
    %105 = vector.shape_cast %104 : vector<8x1xf32> to vector<1x8x1xf32>
    %106 = vector.broadcast %105 : vector<1x8x1xf32> to vector<2x8x128xf32>
    %107 = arith.mulf %106, %23 : vector<2x8x128xf32>
    %108 = arith.addf %103, %107 : vector<2x8x128xf32>
    %cst_21 = arith.constant dense<0.000000e+00> : vector<8xf32>
    %109 = vector.multi_reduction <add>, %108, %cst_21 [0, 2] : vector<2x8x128xf32> to vector<8xf32>
    %110 = vector.shape_cast %109 : vector<8xf32> to vector<1x8x1xf32>
    %cst_22 = arith.constant 2.560000e+02 : f32
    %111 = vector.broadcast %cst_22 : f32 to vector<1x8x1xf32>
    %112 = arith.divf %110, %111 : vector<1x8x1xf32>
    %113 = vector.broadcast %112 : vector<1x8x1xf32> to vector<2x8x128xf32>
    %114 = arith.subf %108, %113 : vector<2x8x128xf32>
    %115 = arith.mulf %114, %114 : vector<2x8x128xf32>
    %cst_23 = arith.constant dense<0.000000e+00> : vector<8xf32>
    %116 = vector.multi_reduction <add>, %115, %cst_23 [0, 2] : vector<2x8x128xf32> to vector<8xf32>
    %117 = vector.shape_cast %116 : vector<8xf32> to vector<1x8x1xf32>
    %cst_24 = arith.constant 2.560000e+02 : f32
    %118 = vector.broadcast %cst_24 : f32 to vector<1x8x1xf32>
    %119 = arith.divf %117, %118 : vector<1x8x1xf32>
    %cst_25 = arith.constant 9.99999974E-6 : f32
    %120 = vector.broadcast %cst_25 : f32 to vector<1x8x1xf32>
    %121 = arith.addf %119, %120 : vector<1x8x1xf32>
    %122 = math.rsqrt %121 : vector<1x8x1xf32>
    %123 = vector.extract_strided_slice %1 {offsets = [0, 18], sizes = [8, 1], strides = [1, 1]} : vector<8x24xf32> to vector<8x1xf32>
    %124 = vector.extract_strided_slice %1 {offsets = [0, 19], sizes = [8, 1], strides = [1, 1]} : vector<8x24xf32> to vector<8x1xf32>
    %125 = vector.broadcast %122 : vector<1x8x1xf32> to vector<2x8x128xf32>
    %126 = arith.mulf %114, %125 : vector<2x8x128xf32>
    %127 = vector.shape_cast %123 : vector<8x1xf32> to vector<1x8x1xf32>
    %128 = vector.broadcast %127 : vector<1x8x1xf32> to vector<2x8x128xf32>
    %129 = arith.mulf %128, %126 : vector<2x8x128xf32>
    %130 = vector.shape_cast %124 : vector<8x1xf32> to vector<1x8x1xf32>
    %131 = vector.broadcast %130 : vector<1x8x1xf32> to vector<2x8x128xf32>
    %132 = arith.addf %129, %131 : vector<2x8x128xf32>
    %cst_26 = arith.constant 0.000000e+00 : f32
    %133 = vector.broadcast %cst_26 : f32 to vector<2x8x128xf32>
    %134 = arith.maximumf %132, %133 : vector<2x8x128xf32>
    %135 = arith.addf %84, %134 : vector<2x8x128xf32>
    %136 = vector.extract_strided_slice %1 {offsets = [0, 8], sizes = [8, 1], strides = [1, 1]} : vector<8x24xf32> to vector<8x1xf32>
    %137 = vector.shape_cast %136 : vector<8x1xf32> to vector<1x8x1xf32>
    %138 = vector.broadcast %137 : vector<1x8x1xf32> to vector<2x8x128xf32>
    %139 = arith.mulf %138, %44 : vector<2x8x128xf32>
    %140 = vector.extract_strided_slice %1 {offsets = [0, 9], sizes = [8, 1], strides = [1, 1]} : vector<8x24xf32> to vector<8x1xf32>
    %141 = vector.shape_cast %140 : vector<8x1xf32> to vector<1x8x1xf32>
    %142 = vector.broadcast %141 : vector<1x8x1xf32> to vector<2x8x128xf32>
    %143 = arith.mulf %142, %30 : vector<2x8x128xf32>
    %144 = arith.addf %139, %143 : vector<2x8x128xf32>
    %145 = vector.extract_strided_slice %1 {offsets = [0, 10], sizes = [8, 1], strides = [1, 1]} : vector<8x24xf32> to vector<8x1xf32>
    %146 = vector.shape_cast %145 : vector<8x1xf32> to vector<1x8x1xf32>
    %147 = vector.broadcast %146 : vector<1x8x1xf32> to vector<2x8x128xf32>
    %148 = arith.mulf %147, %16 : vector<2x8x128xf32>
    %149 = arith.addf %144, %148 : vector<2x8x128xf32>
    %150 = vector.extract_strided_slice %1 {offsets = [0, 11], sizes = [8, 1], strides = [1, 1]} : vector<8x24xf32> to vector<8x1xf32>
    %151 = vector.shape_cast %150 : vector<8x1xf32> to vector<1x8x1xf32>
    %152 = vector.broadcast %151 : vector<1x8x1xf32> to vector<2x8x128xf32>
    %153 = arith.mulf %152, %0 : vector<2x8x128xf32>
    %154 = arith.addf %149, %153 : vector<2x8x128xf32>
    %155 = vector.extract_strided_slice %1 {offsets = [0, 12], sizes = [8, 1], strides = [1, 1]} : vector<8x24xf32> to vector<8x1xf32>
    %156 = vector.shape_cast %155 : vector<8x1xf32> to vector<1x8x1xf32>
    %157 = vector.broadcast %156 : vector<1x8x1xf32> to vector<2x8x128xf32>
    %158 = arith.mulf %157, %9 : vector<2x8x128xf32>
    %159 = arith.addf %154, %158 : vector<2x8x128xf32>
    %160 = vector.extract_strided_slice %1 {offsets = [0, 13], sizes = [8, 1], strides = [1, 1]} : vector<8x24xf32> to vector<8x1xf32>
    %161 = vector.shape_cast %160 : vector<8x1xf32> to vector<1x8x1xf32>
    %162 = vector.broadcast %161 : vector<1x8x1xf32> to vector<2x8x128xf32>
    %163 = arith.mulf %162, %23 : vector<2x8x128xf32>
    %164 = arith.addf %159, %163 : vector<2x8x128xf32>
    %165 = vector.extract_strided_slice %1 {offsets = [0, 14], sizes = [8, 1], strides = [1, 1]} : vector<8x24xf32> to vector<8x1xf32>
    %166 = vector.shape_cast %165 : vector<8x1xf32> to vector<1x8x1xf32>
    %167 = vector.broadcast %166 : vector<1x8x1xf32> to vector<2x8x128xf32>
    %168 = arith.mulf %167, %37 : vector<2x8x128xf32>
    %169 = arith.addf %164, %168 : vector<2x8x128xf32>
    %cst_27 = arith.constant dense<0.000000e+00> : vector<8xf32>
    %170 = vector.multi_reduction <add>, %169, %cst_27 [0, 2] : vector<2x8x128xf32> to vector<8xf32>
    %171 = vector.shape_cast %170 : vector<8xf32> to vector<1x8x1xf32>
    %cst_28 = arith.constant 2.560000e+02 : f32
    %172 = vector.broadcast %cst_28 : f32 to vector<1x8x1xf32>
    %173 = arith.divf %171, %172 : vector<1x8x1xf32>
    %174 = vector.broadcast %173 : vector<1x8x1xf32> to vector<2x8x128xf32>
    %175 = arith.subf %169, %174 : vector<2x8x128xf32>
    %176 = arith.mulf %175, %175 : vector<2x8x128xf32>
    %cst_29 = arith.constant dense<0.000000e+00> : vector<8xf32>
    %177 = vector.multi_reduction <add>, %176, %cst_29 [0, 2] : vector<2x8x128xf32> to vector<8xf32>
    %178 = vector.shape_cast %177 : vector<8xf32> to vector<1x8x1xf32>
    %cst_30 = arith.constant 2.560000e+02 : f32
    %179 = vector.broadcast %cst_30 : f32 to vector<1x8x1xf32>
    %180 = arith.divf %178, %179 : vector<1x8x1xf32>
    %cst_31 = arith.constant 9.99999974E-6 : f32
    %181 = vector.broadcast %cst_31 : f32 to vector<1x8x1xf32>
    %182 = arith.addf %180, %181 : vector<1x8x1xf32>
    %183 = math.rsqrt %182 : vector<1x8x1xf32>
    %184 = vector.extract_strided_slice %1 {offsets = [0, 20], sizes = [8, 1], strides = [1, 1]} : vector<8x24xf32> to vector<8x1xf32>
    %185 = vector.extract_strided_slice %1 {offsets = [0, 21], sizes = [8, 1], strides = [1, 1]} : vector<8x24xf32> to vector<8x1xf32>
    %186 = vector.broadcast %183 : vector<1x8x1xf32> to vector<2x8x128xf32>
    %187 = arith.mulf %175, %186 : vector<2x8x128xf32>
    %188 = vector.shape_cast %184 : vector<8x1xf32> to vector<1x8x1xf32>
    %189 = vector.broadcast %188 : vector<1x8x1xf32> to vector<2x8x128xf32>
    %190 = arith.mulf %189, %187 : vector<2x8x128xf32>
    %191 = vector.shape_cast %185 : vector<8x1xf32> to vector<1x8x1xf32>
    %192 = vector.broadcast %191 : vector<1x8x1xf32> to vector<2x8x128xf32>
    %193 = arith.addf %190, %192 : vector<2x8x128xf32>
    %cst_32 = arith.constant 0.000000e+00 : f32
    %194 = vector.broadcast %cst_32 : f32 to vector<2x8x128xf32>
    %195 = arith.maximumf %193, %194 : vector<2x8x128xf32>
    %196 = arith.addf %135, %195 : vector<2x8x128xf32>
    %cst_33 = arith.constant 0.333333343 : f32
    %197 = vector.broadcast %cst_33 : f32 to vector<2x8x128xf32>
    %198 = arith.mulf %196, %197 : vector<2x8x128xf32>
    %199 = arith.addf %0, %198 : vector<2x8x128xf32>
    %c0_34 = arith.constant 0 : index
    %c0_35 = arith.constant 0 : index
    %c0_36 = arith.constant 0 : index
    %200 = vector.load %arg3[%c0_34, %c0_35, %c0_36] : memref<2x8x128xf32, #tpu.memory_space<vmem>>, vector<2x8x128xf32>
    tpu.vector_store %arg3[%c0_34, %c0_35, %c0_36], %199 {strides = array<i32>} : memref<2x8x128xf32, #tpu.memory_space<vmem>>, vector<2x8x128xf32>,
    return
  }
  func.func @transform_0(%arg0: i32) -> (i32, i32, i32) {
    %c0_i32 = arith.constant 0 : i32
    %c0_i32_0 = arith.constant 0 : i32
    %c0_i32_1 = arith.constant 0 : i32
    return %c0_i32, %arg0, %c0_i32_0 : i32, i32, i32
  }
  func.func @transform_1(%arg0: i32) -> (i32, i32) {
    %c0_i32 = arith.constant 0 : i32
    %c0_i32_0 = arith.constant 0 : i32
    return %arg0, %c0_i32 : i32, i32
  }
  func.func @transform_2(%arg0: i32) -> (i32, i32, i32) {
    %c0_i32 = arith.constant 0 : i32
    %c0_i32_0 = arith.constant 0 : i32
    %c0_i32_1 = arith.constant 0 : i32
    return %c0_i32, %arg0, %c0_i32_0 : i32, i32, i32
  }
}

</mosaic_0001>

<bundles_post_ra>
// kernel: tcn1d_forward.1
= control target key start
LH: loop header
LB: loop body
LE: loop exit
PB: predicated region body
PF: predicated region fallthrough
CT: control target
= control target key end

     0   :  { %7 = vsyncpa [#allocation3], 0  ;;  %s1171_s0 = inlined_call_operand.hbm [shape: f32[2,16,128], index: 0, kind: input, shape index: {}]   ;;  %s1172_s1 = inlined_call_operand.hbm [shape: f32[16,24], index: 1, kind: input, shape index: {}]   ;;  %s1173_s2 = inlined_call_operand.hbm [shape: f32[2,16,128], index: 2, kind: output, shape index: {}]  }
   0x1   :  { %9 = vsyncpa [#allocation3 + $0x1], 0 }
   0x2   :  { %10 = vsyncpa [#allocation6], 0 }
   0x3   :  { %12 = vsyncpa [#allocation6 + $0x1], 0 }
   0x4   :  { %13 = vsyncpa [#allocation4], 0 }
   0x5   :  { %15 = vsyncpa [#allocation4 + $0x1], 0  ;;  %s886_s9 = smov 0   ;;  %s888_s10 = smov 0  }
   0x6   :  { %s890_s11 = smov 0   ;;  %s892_s12 = smov 0  }
   0x7 LB: > { %s907_s13 = sadd.s32 4294967295, %s833_s12   ;;  %s582_s14 = sadd.s32 4294967294, %s833_s12   ;;  %s833_s12 = sphi %s892_s12, %s1191_s12   ;;  %s829_s11 = sphi %s890_s11, %s1190_s11   ;;  %s825_s10 = sphi %s888_s10, %s1189_s10   ;;  %s821_s9 = sphi %s886_s9, %s1188_s9  }
   0x8   : > { %s911_s15 = sadd.s32 1, %s833_s12   ;;  %s28_s16 = sadd.s32 1, %s829_s11 }
   0x9   : > { %s25_s17 = ssub.s32 %s833_s12, %s911_s15  ;;  %p35_p0 = scmp.ne.s32.totalorder %s829_s11, %s825_s10 }
   0xa   : > { %p26_p1 = scmp.eq.s32.totalorder %s25_s17, 0  ;;  %p36_p2 = scmp.eq.s32.totalorder %s833_s12, 0 }
   0xb   : > { %p41_p3 = scmp.ne.s32.totalorder %s825_s10, %s821_s9  ;;  %p42_p4 = scmp.eq.s32.totalorder %s907_s13, 0 }
   0xc   : > { %s923_s18 = scalar_select %p26_p1, %s829_s11, %s28_s16  }
   0xd   : > { %p925_p5 = por %p36_p2, %p35_p0  ;;  %p929_p6 = por %p42_p4, %p41_p3 }
   0xe   : > { %p91_p7 = scmp.eq.s32.totalorder %s907_s13, 1  ;;  %p97_p8 = scmp.eq.s32.totalorder %s582_s14, 1 }
   0xf   : > { %s1177_s20 = scalar_select %p929_p6, 1, 0 }
  0x10   : > { %p614_p10 = scmp.lt.s32.totalorder %s833_s12, 2  ;;  %p936_p11 = por %p91_p7, %p35_p0 }
  0x11   : > { %p940_p12 = por %p97_p8, %p41_p3  ;;  %s945_s23 = sand.u32 1, %s829_s11  }
  0x12   : > { %s1178_s21 = scalar_select %p936_p11, 1, 0 }
  0x13   : > { %s1179_s22 = scalar_select %p940_p12, 1, 0 }
  0x14   : > { %s586_s24 = sshll.u32 %s833_s12, 7  ;;  %s585_s25 = sshll.u32 %s945_s23, 4 }
  0x15   : > { %s954_s28 = scalar_lea.hbm %s1171_s0, %s586_s24  ;;  %s121_s29 = scalar_lea.vmem [#allocation2], %s585_s25 }
  0x16   : > { %s127_s30 = sshll.u32 %s121_s29, 4  ;;  %p958_p13 = pnand %p614_p10, %p925_p5  ;;  %s962_s30 = int_to_ptr.vmem [resolvable:$true] %s127_s30 }
  0x17   : > { %s118_s4 = scalar_lea.sflag [#allocation3], %s945_s23  ;;  %s709_s5 = scalar_lea.hbm %s954_s28, 256 }
  0x18   : > { %p710_p1 = scmp.ne.s32.totalorder %s954_s28, %s709_s5  ;;  %p711_p2 = pneg %p958_p13 }
  0x19   : > { %s714_s8 = scalar_lea.hbm %s1171_s0, 512  ;;  %p715_p5 = scmp.lt.s32.totalorder %s954_s28, %s1171_s0 }
  0x1a   : > { %p712_p3 = pnand %p711_p2, %p710_p1  ;;  %p716_p7 = scmp.lt.s32.totalorder %s714_s8, %s709_s5 }
  0x1c   : > { %p713_p4 = pneg %p712_p3  ;;  %p717_p8 = por %p716_p7, %p715_p5 }
  0x1e   : > { %p718_p10 = pnand %p717_p8, %p713_p4 }
  0x20   : > { %721 = shalt.err (!%p718_p10)
}
  0x21   : > { %s722_s17 = scalar_lea.vmem %s962_s30, 256  ;;  %s835_s19 = smov [#allocation2]  }
  0x22   : > { %p723_p9 = scmp.ne.s32.totalorder %s962_s30, %s722_s17  ;;  %s727_s25 = sshll.u32 %s835_s19, 4  ;;  %s728_s25 = int_to_ptr.vmem [resolvable:$false] %s727_s25 }
  0x23   : > { %s729_s26 = scalar_lea.vmem %s728_s25, 512  ;;  %p730_p0 = scmp.lt.s32.totalorder %s962_s30, %s728_s25 }
  0x24   : > { %p725_p1 = pnand %p723_p9, %p711_p2  ;;  %p731_p12 = scmp.lt.s32.totalorder %s729_s26, %s722_s17 }
  0x26   : > { %p726_p3 = pneg %p725_p1  ;;  %p732_p11 = por %p731_p12, %p730_p0 }
  0x28   : > { %p733_p5 = pnand %p732_p11, %p726_p3 }
  0x2a   : > { %736 = shalt.err (!%p733_p5)
}
  0x2b   : > { %s836_s27 = smov 256   ;;  %s837_s29 = smov 128  }
  0x2c   : > { %s838_s5 = smov 8   ;;  %p153_p9 = scmp.lt.s32.totalorder %s833_s12, 3 }
  0x2d   : > { %606 = dma.hbm_to_vmem [thread:$0]  (!%p958_p13), %s954_s28, 256, %s962_s30, %s118_s4, %s836_s27, %s837_s29, %s838_s5  }
  0x2e   : > { %s587_s6 = sshll.u32 %s945_s23, 3  ;;  %s999_s14 = scalar_lea.hbm %s1172_s1, %s586_s24 }
  0x2f   : > { %p1181_p11 = scmp.ge.s32.totalorder %s833_s12, 1  ;;  %s141_s17 = scalar_lea.vmem [#allocation5], %s587_s6 }
  0x30   : > { %s148_s19 = sshll.u32 %s141_s17, 4  ;;  %s138_s28 = scalar_lea.sflag [#allocation6], %s945_s23  ;;  %s149_s19 = int_to_ptr.vmem [resolvable:$true] %s148_s19 }
  0x31   : > { %p1003_p12 = pnand %p1181_p11, %p153_p9  ;;  %s737_s30 = scalar_lea.hbm %s999_s14, 128 }
  0x32   : > { %p738_p0 = scmp.ne.s32.totalorder %s999_s14, %s737_s30  ;;  %s742_s25 = scalar_lea.hbm %s1172_s1, 256 }
  0x33   : > { %s1182_s16 = scalar_select %p1003_p12, 1, 0 }
  0x34   : > { %p740_p4 = pnand %p738_p0, %p711_p2  ;;  %p743_p8 = scmp.lt.s32.totalorder %s999_s14, %s1172_s1 }
  0x35   : > { %p744_p10 = scmp.lt.s32.totalorder %s742_s25, %s737_s30 }
  0x36   : > { %p741_p7 = pneg %p740_p4 }
  0x37   : > { %p745_p1 = por %p744_p10, %p743_p8 }
  0x39   : > { %p746_p3 = pnand %p745_p1, %p741_p7 }
  0x3b   : > { %749 = shalt.err (!%p746_p3)
}
  0x3c   : > { %s750_s29 = scalar_lea.vmem %s149_s19, 128  ;;  %s839_s23 = smov [#allocation5]  }
  0x3d   : > { %p751_p5 = scmp.ne.s32.totalorder %s149_s19, %s750_s29  ;;  %s755_s5 = sshll.u32 %s839_s23, 4  ;;  %s756_s5 = int_to_ptr.vmem [resolvable:$false] %s755_s5 }
  0x3e   : > { %s757_s6 = scalar_lea.vmem %s756_s5, 256  ;;  %p758_p0 = scmp.lt.s32.totalorder %s149_s19, %s756_s5 }
  0x3f   : > { %p753_p9 = pnand %p751_p5, %p711_p2  ;;  %p759_p4 = scmp.lt.s32.totalorder %s757_s6, %s750_s29 }
  0x41   : > { %p754_p11 = pneg %p753_p9  ;;  %p760_p6 = por %p759_p4, %p758_p0 }
  0x43   : > { %p761_p12 = pnand %p760_p6, %p754_p11 }
  0x45   : > { %764 = shalt.err (!%p761_p12)
}
  0x46   : > { %609 = dma.hbm_to_vmem [thread:$0]  (!%p958_p13), %s999_s14, 128, %s149_s19, %s138_s28  }
  0x47   : > { %p1183_p7 = scmp.ne.s32.totalorder %s1182_s16, 0 }
  0x48   : > { %s1029_s7 = sand.u32 (!%p1183_p7), 1, %s825_s10   ;;  %p1184_p6 = scmp.ne.s32.totalorder (!%p1183_p7), %s1177_s20, 0 }
  0x49   : > { %157 = sbr.rel (%p1183_p7) target bundleno = 612 (0x264), region = 28  ;;  %s590_s8 = sshll.u32 (!%p1183_p7), %s1029_s7, 4 }
  0x4a   : > { %s160_s17 = scalar_lea.sflag (!%p1183_p7), [#allocation3], %s1029_s7  ;;  %s163_s30 = scalar_lea.vmem (!%p1183_p7), [#allocation2], %s590_s8 }
  0x4e   : > { %808 = dma.done.wait (%p1184_p6), %s160_s17, 256  }
  0x4f   : > { %810 = vsyncadd (%p1184_p6), %s160_s17, 4294967040  ;;  %s591_s3 = sshll.u32 %s1029_s7, 3  ;;  %s169_s14 = scalar_lea.sflag [#allocation6], %s1029_s7 }
  0x50   : > { %s172_s16 = scalar_lea.vmem [#allocation5], %s591_s3 }
  0x51   : > { %812 = dma.done.wait (%p1184_p6), %s169_s14, 128  }
  0x52   : > { %814 = vsyncadd (%p1184_p6), %s169_s14, 4294967168  ;;  %v840_v0 = vmov 8   ;;  %v841_v1 = vmov 3   ;;  %v1045_v2 = vld [vmem:[%s172_s16] sm:$0xff]  ;;  %v842_v3 = vmov 4   ;;  %v843_v4 = vmov 9  }
  0x53   : > { %681 = vset.pattern.permute.xlu0 %v840_v0  ;;  %683 = vset.pattern.permute.xlu1 %v841_v1  ;;  %v1051_v5 = vld [vmem:[%s163_s30] sm:$0xff]  ;;  %v844_v6 = vmov 10   ;;  %s845_s20 = smov 2   ;;  %v846_v7 = vmov 5   ;;  %v1055_v8 = vld [vmem:[%s163_s30 + $0x8] sm:$0xff]  ;;  %s847_s19 = smov 3   ;;  %v201_v34 = vlaneseq }
  0x54   : > { %312 = vperm.xlu1 %683, %v1045_v2   ;;  %382 = vperm.xlu0 %681, %v1045_v2   ;;  %v848_v9 = vmov 11   ;;  %s849_s28 = smov 1   ;;  %v850_v10 = vmov 1   ;;  %v851_v11 = vmov 0   ;;  %v852_v12 = vmov 2   ;;  %s854_s24 = smov 127  }
  0x55   : > { %v853_v13 = vmov 6   ;;  %v855_v14 = vmov 14   ;;  %v856_v15 = vmov 12   ;;  %s857_s4 = smov 125   ;;  %v858_v16 = vmov 7   ;;  %s860_s25 = smov 126  }
  0x56   : > { %v859_v17 = vmov 13   ;;  %v1080_v36 = vand.u32 127, %v201_v34  ;;  %s197_s26 = scalar_lea.vmem [#allocation7], %s590_s8  ;;  %s594_s29 = sshll.u32 %s907_s13, 7 }
  0x57   : > { %s486_s27 = sshll.u32 %s197_s26, 4  ;;  %s1126_s6 = scalar_lea.hbm %s1173_s2, %s594_s29  ;;  %s1121_s27 = int_to_ptr.vmem [resolvable:$true] %s486_s27 }
  0x58   : > { %684 = vset.pattern.permute.xlu1 %v842_v3  ;;  %682 = vset.pattern.permute.xlu0 %v843_v4  ;;  %vm234_vm0 = vcmp.ge.s32.totalorder %v1080_v36, 2  ;;  %vm252_vm1 = vcmp.ge.s32.totalorder %v1080_v36, 3  ;;  %vm216_vm2 = vcmp.ge.s32.totalorder %v1080_v36, 1  ;;  %vm207_vm3 = vcmp.lt.s32.totalorder %v1080_v36, 127  ;;  %s474_s8 = scalar_lea.sflag [#allocation4], %s1029_s7  ;;  %s765_s13 = scalar_lea.vmem %s1121_s27, 256 }
  0x59   : > { %318 = vperm.xlu1 %684, %v1045_v2   ;;  %388 = vperm.xlu0 %682, %v1045_v2   ;;  %vm225_vm4 = vcmp.lt.s32.totalorder %v1080_v36, 126  ;;  %vm243_vm5 = vcmp.lt.s32.totalorder %v1080_v36, 125  ;;  %v864_v36 = vmov 19   ;;  %p766_p13 = scmp.ne.s32.totalorder %s1121_s27, %s765_s13  ;;  %p1185_p2 = scmp.ne.s32.totalorder %s1178_s21, 0 }
  0x5a   : > { %s867_s17 = smov [#allocation7]  }
  0x5b   : > { %p767_p12 = pnand %p766_p13, %p1185_p2  ;;  %s769_s30 = sshll.u32 %s867_s17, 4  ;;  %s770_s30 = int_to_ptr.vmem [resolvable:$false] %s769_s30 }
  0x5c   : > { %s771_s3 = scalar_lea.vmem %s770_s30, 512  ;;  %p772_p10 = scmp.lt.s32.totalorder %s1121_s27, %s770_s30 }
  0x5d   : > { %685 = vset.pattern.permute.xlu1 %v844_v6  ;;  %230 = vrot.lane.b32.xlu0 %v1051_v5, %s845_s20  ;;  %p768_p8 = pneg %p767_p12  ;;  %p773_p1 = scmp.lt.s32.totalorder %s771_s3, %s765_s13 }
  0x5e   : > { %396 = vperm.xlu1 %685, %v1045_v2   ;;  %686 = vset.pattern.permute.xlu0 %v846_v7 }
  0x5f   : > { %p774_p3 = por %p773_p1, %p772_p10 }
  0x61   : > { %248 = vrot.lane.b32.xlu0 %v1051_v5, %s847_s19  ;;  %p775_p5 = pnand %p774_p3, %p768_p8 }
  0x62   : > { %232 = vrot.lane.b32.xlu1 %v1055_v8, %s845_s20 }
  0x63   : > { %687 = vset.pattern.permute.xlu1 %v848_v9 }
  0x65   : > { %326 = vperm.xlu0 %686, %v1045_v2  }
  0x66   : > { %250 = vrot.lane.b32.xlu1 %v1055_v8, %s847_s19 }
  0x69   : > { %214 = vrot.lane.b32.xlu0 %v1055_v8, %s849_s28 }
  0x6a   : > { %404 = vperm.xlu1 %687, %v1045_v2   ;;  %689 = vset.pattern.permute.xlu0 %v850_v10 }
  0x6d   : > { %265 = vperm.xlu0 %689, %v1045_v2  }
  0x6e   : > { %212 = vrot.lane.b32.xlu1 %v1051_v5, %s849_s28 }
  0x6f   : > { %688 = vset.pattern.permute.xlu1 %v851_v11 }
  0x71   : > { %692 = vset.pattern.permute.xlu0 %v852_v12 }
  0x72   : > { %259 = vperm.xlu1 %688, %v1045_v2   ;;  %273 = vperm.xlu0 %692, %v1045_v2  }
  0x76   : > { %690 = vset.pattern.permute.xlu1 %v853_v13  ;;  %203 = vrot.lane.b32.xlu0 %v1051_v5, %s854_s24 }
  0x77   : > { %334 = vperm.xlu1 %690, %v1045_v2   ;;  %695 = vset.pattern.permute.xlu0 %v855_v14 }
  0x7a   : > { %428 = vperm.xlu0 %695, %v1045_v2  }
  0x7b   : > { %691 = vset.pattern.permute.xlu1 %v856_v15 }
  0x7c   : > { %412 = vperm.xlu1 %691, %v1045_v2  }
  0x7e   : > { %239 = vrot.lane.b32.xlu0 %v1051_v5, %s857_s4 }
  0x80   : > { %693 = vset.pattern.permute.xlu1 %v858_v16 }
  0x81   : > { %342 = vperm.xlu1 %693, %v1045_v2  }
  0x85   : > { %694 = vset.pattern.permute.xlu1 %v859_v17 }
  0x86   : > { %420 = vperm.xlu1 %694, %v1045_v2  }
  0x8a   : > { %205 = vrot.lane.b32.xlu1 %v1055_v8, %s854_s24 }
  0x8e   : > { %221 = vrot.lane.b32.xlu1 %v1051_v5, %s860_s25 }
  0x92   : > { %223 = vrot.lane.b32.xlu1 %v1055_v8, %s860_s25 }
  0x96   : > { %241 = vrot.lane.b32.xlu1 %v1055_v8, %s857_s4 }
  0xcf   : > { %v313_v18 = vpop.permute.xlu1 %312  ;;  %v383_v19 = vpop.permute.xlu0 %382 }
  0xd4   : > { %v319_v20 = vpop.permute.xlu1 %318  ;;  %v389_v21 = vpop.permute.xlu0 %388 }
  0xd8   : > { %v231_v23 = vpop.permute.xlu0 %230 }
  0xd9   : > { %v397_v22 = vpop.permute.xlu1 %396  ;;  %v237_v40 = vsel %vm234_vm0, %v231_v23, 0.0 }
  0xda   : > { %v391_v44 = vmul.f32 %v389_v21, %v237_v40  ;;  %v315_v61 = vmul.f32 %v313_v18, %v237_v40 }
  0xdc   : > { %v249_v25 = vpop.permute.xlu0 %248 }
  0xdd   : > { %v233_v24 = vpop.permute.xlu1 %232  ;;  %v255_v39 = vsel %vm252_vm1, %v249_v25, 0.0 }
  0xde   : > { %v238_v41 = vsel %vm234_vm0, %v233_v24, 0.0  ;;  %v385_v45 = vmul.f32 %v383_v19, %v255_v39 }
  0xdf   : > { %v392_v49 = vmul.f32 %v389_v21, %v238_v41  ;;  %v316_v0 = vmul.f32 %v313_v18, %v238_v41 }
  0xe0   : > { %v327_v28 = vpop.permute.xlu0 %326  ;;  %v393_v56 = vadd.f32 %v391_v44, %v385_v45 }
  0xe1   : > { %v251_v26 = vpop.permute.xlu1 %250  ;;  %v329_v6 = vmul.f32 %v327_v28, %v1051_v5  ;;  %v330_v11 = vmul.f32 %v327_v28, %v1055_v8 }
  0xe2   : > { %v256_v42 = vsel %vm252_vm1, %v251_v26, 0.0 }
  0xe3   : > { %v386_v50 = vmul.f32 %v383_v19, %v256_v42 }
  0xe4   : > { %v215_v30 = vpop.permute.xlu0 %214 }
  0xe5   : > { %v1078_v27 = vpop.permute.xlu1 %404  ;;  %v220_v46 = vsel %vm216_vm2, %v215_v30, 0.0  ;;  %v394_v1 = vadd.f32 %v392_v49, %v386_v50 }
  0xe6   : > { %v322_v57 = vmul.f32 %v319_v20, %v220_v46  ;;  %v400_v3 = vmul.f32 %v397_v22, %v220_v46  ;;  %v407_v19 = vmul.f32 %v1078_v27, %v1051_v5  ;;  %v408_v26 = vmul.f32 %v1078_v27, %v1055_v8 }
  0xe8   : > { %v266_v33 = vpop.permute.xlu0 %265  ;;  %v324_v12 = vadd.f32 %v322_v57, %v316_v0  ;;  %v402_v18 = vadd.f32 %v400_v3, %v394_v1 }
  0xe9   : > { %v213_v29 = vpop.permute.xlu1 %212  ;;  %v268_v52 = vmul.f32 %v266_v33, %v1051_v5  ;;  %v269_v53 = vmul.f32 %v266_v33, %v1055_v8 }
  0xea   : > { %v219_v47 = vsel %vm216_vm2, %v213_v29, 0.0  ;;  %v332_v30 = vadd.f32 %v330_v11, %v324_v12  ;;  %v410_v40 = vadd.f32 %v408_v26, %v402_v18 }
  0xeb   : > { %v321_v58 = vmul.f32 %v319_v20, %v219_v47  ;;  %v399_v59 = vmul.f32 %v397_v22, %v219_v47 }
  0xed   : > { %v260_v31 = vpop.permute.xlu1 %259  ;;  %v274_v37 = vpop.permute.xlu0 %273  ;;  %v323_v13 = vadd.f32 %v321_v58, %v315_v61  ;;  %v401_v14 = vadd.f32 %v399_v59, %v393_v56  ;;  %v861_v58 = vmov 16   ;;  %v865_v59 = vmov 20  }
  0xee   : > { %v262_v54 = vmul.f32 %v260_v31, %v219_v47  ;;  %v263_v55 = vmul.f32 %v260_v31, %v220_v46  ;;  %696 = vset.pattern.permute.xlu1 %v861_v58 }
  0xef   : > { %v331_v28 = vadd.f32 %v329_v6, %v323_v13  ;;  %v409_v29 = vadd.f32 %v407_v19, %v401_v14 }
  0xf0   : > { %v270_v7 = vadd.f32 %v268_v52, %v262_v54  ;;  %v271_v9 = vadd.f32 %v269_v53, %v263_v55 }
  0xf1   : > { %v204_v43 = vpop.permute.xlu0 %203 }
  0xf2   : > { %v335_v32 = vpop.permute.xlu1 %334  ;;  %v210_v51 = vsel %vm207_vm3, %v204_v43, 0.0 }
  0xf3   : > { %v276_v62 = vmul.f32 %v274_v37, %v210_v51  ;;  %v337_v20 = vmul.f32 %v335_v32, %v210_v51 }
  0xf5   : > { %v429_v60 = vpop.permute.xlu0 %428  ;;  %v278_v16 = vadd.f32 %v276_v62, %v270_v7  ;;  %v339_v41 = vadd.f32 %v337_v20, %v331_v28 }
  0xf7   : > { %v413_v35 = vpop.permute.xlu1 %412 }
  0xf8   : > { %v415_v23 = vmul.f32 %v413_v35, %v210_v51 }
  0xf9   : > { %v240_v22 = vpop.permute.xlu0 %239 }
  0xfa   : > { %v417_v42 = vadd.f32 %v415_v23, %v409_v29 }
  0xfc   : > { %v1084_v38 = vpop.permute.xlu1 %342 }
 0x101   : > { %v421_v48 = vpop.permute.xlu1 %420 }
 0x105   : > { %v206_v63 = vpop.permute.xlu1 %205 }
 0x106   : > { %v211_v4 = vsel %vm207_vm3, %v206_v63, 0.0 }
 0x107   : > { %v277_v10 = vmul.f32 %v274_v37, %v211_v4  ;;  %v338_v24 = vmul.f32 %v335_v32, %v211_v4  ;;  %v416_v31 = vmul.f32 %v413_v35, %v211_v4  ;;  %v246_v37 = vsel %vm243_vm5, %v240_v22, 0.0 }
 0x108   : > { %v431_v45 = vmul.f32 %v429_v60, %v246_v37 }
 0x109   : > { %v222_v15 = vpop.permute.xlu1 %221  ;;  %v279_v17 = vadd.f32 %v277_v10, %v271_v9  ;;  %v340_v43 = vadd.f32 %v338_v24, %v332_v30  ;;  %v418_v35 = vadd.f32 %v416_v31, %v410_v40 }
 0x10a   : > { %v228_v21 = vsel %vm225_vm4, %v222_v15, 0.0 }
 0x10b   : > { %v280_v25 = vadd.f32 %v279_v17, %v278_v16  ;;  %v345_v33 = vmul.f32 %v1084_v38, %v228_v21  ;;  %v423_v34 = vmul.f32 %v421_v48, %v228_v21 }
 0x10d   : > { %v224_v39 = vpop.permute.xlu1 %223  ;;  %281 = vadd.xlane.f32.xlu0 %v280_v25  ;;  %v425_v46 = vadd.f32 %v423_v34, %v417_v42  ;;  %v347_v49 = vadd.f32 %v345_v33, %v339_v41 }
 0x10e   : > { %v229_v32 = vsel %vm225_vm4, %v224_v39, 0.0 }
 0x10f   : > { %v346_v27 = vmul.f32 %v1084_v38, %v229_v32  ;;  %v424_v44 = vmul.f32 %v421_v48, %v229_v32  ;;  %v433_v55 = vadd.f32 %v431_v45, %v425_v46  ;;  %v862_v38 = vmov 18  }
 0x110   : > { %697 = vset.pattern.permute.xlu0 %v862_v38  ;;  %v863_v48 = vmov 17  }
 0x111   : > { %v242_v47 = vpop.permute.xlu1 %241  ;;  %v348_v50 = vadd.f32 %v346_v27, %v340_v43  ;;  %v426_v52 = vadd.f32 %v424_v44, %v418_v35 }
 0x112   : > { %v247_v51 = vsel %vm243_vm5, %v242_v47, 0.0 }
 0x113   : > { %v432_v53 = vmul.f32 %v429_v60, %v247_v51  ;;  %v349_v54 = vadd.f32 %v348_v50, %v347_v49  ;;  %v866_v60 = vmov 21  }
 0x115   : > { %350 = vadd.xlane.f32.xlu1 %v349_v54  ;;  %v434_v56 = vadd.f32 %v432_v53, %v426_v52 }
 0x117   : > { %v435_v57 = vadd.f32 %v434_v56, %v433_v55 }
 0x119   : > { %436 = vadd.xlane.f32.xlu0 %v435_v57 }
 0x126   : > { %298 = vperm.xlu1 %696, %v1045_v2  }
 0x12a   : > { %698 = vset.pattern.permute.xlu1 %v863_v48 }
 0x12b   : > { %304 = vperm.xlu1 %698, %v1045_v2  }
 0x12f   : > { %699 = vset.pattern.permute.xlu1 %v864_v36 }
 0x130   : > { %372 = vperm.xlu1 %699, %v1045_v2  }
 0x134   : > { %700 = vset.pattern.permute.xlu1 %v865_v59 }
 0x135   : > { %452 = vperm.xlu1 %700, %v1045_v2  }
 0x139   : > { %701 = vset.pattern.permute.xlu1 %v866_v60 }
 0x13a   : > { %458 = vperm.xlu1 %701, %v1045_v2  }
 0x196   : > { %v282_v61 = vpop.xlane.xlu0 %281 }
 0x197   : > { %v284_v62 = vmul.f32 0.00390625, %v282_v61 }
 0x199   : > { %v285_v63 = vsub.f32 %v278_v16, %v284_v62  ;;  %v286_v0 = vsub.f32 %v279_v17, %v284_v62 }
 0x19b   : > { %v287_v1 = vmul.f32 %v285_v63, %v285_v63  ;;  %v288_v3 = vmul.f32 %v286_v0, %v286_v0 }
 0x19d   : > { %v289_v4 = vadd.f32 %v288_v3, %v287_v1 }
 0x19e   : > { %v351_v6 = vpop.xlane.xlu1 %350 }
 0x19f   : > { %v352_v7 = vmul.f32 0.00390625, %v351_v6  ;;  %290 = vadd.xlane.f32.xlu0 %v289_v4 }
 0x1a1   : > { %v353_v9 = vsub.f32 %v347_v49, %v352_v7  ;;  %v354_v10 = vsub.f32 %v348_v50, %v352_v7 }
 0x1a2   : > { %v437_v11 = vpop.xlane.xlu0 %436  ;;  %v299_v25 = vpop.permute.xlu1 %298 }
 0x1a3   : > { %v438_v12 = vmul.f32 0.00390625, %v437_v11  ;;  %v355_v13 = vmul.f32 %v353_v9, %v353_v9  ;;  %v356_v14 = vmul.f32 %v354_v10, %v354_v10 }
 0x1a5   : > { %v439_v15 = vsub.f32 %v433_v55, %v438_v12  ;;  %v440_v18 = vsub.f32 %v434_v56, %v438_v12  ;;  %v357_v19 = vadd.f32 %v356_v14, %v355_v13 }
 0x1a6   : > { %v305_v31 = vpop.permute.xlu1 %304 }
 0x1a7   : > { %358 = vadd.xlane.f32.xlu0 %v357_v19  ;;  %v441_v20 = vmul.f32 %v439_v15, %v439_v15  ;;  %v442_v21 = vmul.f32 %v440_v18, %v440_v18 }
 0x1a9   : > { %v443_v16 = vadd.f32 %v442_v21, %v441_v20 }
 0x1ab   : > { %444 = vadd.xlane.f32.xlu0 %v443_v16  ;;  %v373_v37 = vpop.permute.xlu1 %372 }
 0x1b0   : > { %v453_v43 = vpop.permute.xlu1 %452 }
 0x1b5   : > { %v459_v54 = vpop.permute.xlu1 %458 }
 0x1c1   : > { %366 = vperm.xlu0 %697, %v1045_v2  }
 0x1c5   : > { %702 = vset.pattern.permute.xlu0 %v866_v60 }
 0x228   : > { %v291_v17 = vpop.xlane.xlu0 %290 }
 0x229   : > { %v292_v22 = vmul.f32 0.00390625, %v291_v17 }
 0x22b   : > { %v293_v23 = vadd.f32 1e-05, %v292_v22 }
 0x22d   : > { %703 = vrsqrt.f32 %v293_v23 }
 0x230   : > { %v359_v24 = vpop.xlane.xlu0 %358 }
 0x231   : > { %v360_v26 = vmul.f32 0.00390625, %v359_v24 }
 0x233   : > { %v361_v28 = vadd.f32 1e-05, %v360_v26 }
 0x234   : > { %v445_v29 = vpop.xlane.xlu0 %444 }
 0x235   : > { %705 = vrsqrt.f32 %v361_v28  ;;  %v446_v30 = vmul.f32 0.00390625, %v445_v29 }
 0x237   : > { %v447_v33 = vadd.f32 1e-05, %v446_v30 }
 0x239   : > { %707 = vrsqrt.f32 %v447_v33 }
 0x23a   : > { %v704_v34 = vpop.eup %703 }
 0x23b   : > { %v295_v39 = vmul.f32 %v704_v34, %v285_v63  ;;  %v296_v40 = vmul.f32 %v704_v34, %v286_v0 }
 0x23c   : > { %v367_v42 = vpop.permute.xlu0 %366 }
 0x23d   : > { %v301_v41 = vmul.f32 %v299_v25, %v295_v39  ;;  %v302_v32 = vmul.f32 %v299_v25, %v296_v40 }
 0x23f   : > { %v307_v47 = vadd.f32 %v305_v31, %v301_v41  ;;  %v308_v49 = vadd.f32 %v305_v31, %v302_v32 }
 0x241   : > { %v309_v38 = vmax.f32 %v307_v47, 0.0  ;;  %v310_v48 = vmax.f32 %v308_v49, 0.0 }
 0x242   : > { %v706_v2 = vpop.eup %705 }
 0x243   : > { %v363_v27 = vmul.f32 %v706_v2, %v353_v9  ;;  %v364_v44 = vmul.f32 %v706_v2, %v354_v10 }
 0x245   : > { %v369_v45 = vmul.f32 %v367_v42, %v363_v27  ;;  %v370_v35 = vmul.f32 %v367_v42, %v364_v44 }
 0x246   : > { %v708_v46 = vpop.eup %707 }
 0x247   : > { %v375_v50 = vadd.f32 %v373_v37, %v369_v45  ;;  %v376_v51 = vadd.f32 %v373_v37, %v370_v35  ;;  %v449_v52 = vmul.f32 %v708_v46, %v439_v15  ;;  %v450_v53 = vmul.f32 %v708_v46, %v440_v18 }
 0x249   : > { %v377_v55 = vmax.f32 %v375_v50, 0.0  ;;  %v378_v56 = vmax.f32 %v376_v51, 0.0  ;;  %v455_v57 = vmul.f32 %v453_v43, %v449_v52  ;;  %v456_v58 = vmul.f32 %v453_v43, %v450_v53 }
 0x24b   : > { %v461_v36 = vadd.f32 %v459_v54, %v455_v57  ;;  %v462_v59 = vadd.f32 %v459_v54, %v456_v58  ;;  %v379_v60 = vadd.f32 %v377_v55, %v309_v38  ;;  %v380_v61 = vadd.f32 %v378_v56, %v310_v48 }
 0x24d   : > { %v463_v62 = vmax.f32 %v461_v36, 0.0  ;;  %v464_v63 = vmax.f32 %v462_v59, 0.0 }
 0x24f   : > { %v465_v0 = vadd.f32 %v463_v62, %v379_v60  ;;  %v466_v1 = vadd.f32 %v464_v63, %v380_v61 }
 0x251   : > { %v467_v3 = vmul.f32 0.33333334, %v465_v0  ;;  %v468_v4 = vmul.f32 0.33333334, %v466_v1 }
 0x253   : > { %v469_v6 = vadd.f32 %v467_v3, %v1051_v5  ;;  %v470_v7 = vadd.f32 %v468_v4, %v1055_v8 }
 0x255   : > { %471 = vst [vmem:[%s197_s26] sm:$0xff] %v469_v6  ;;  %472 = vst [vmem:[%s197_s26 + $0x8] sm:$0xff] %v470_v7 }
 0x256   : > { %778 = shalt.err (!%p775_p5)
}
 0x257   : > { %s779_s14 = scalar_lea.hbm %s1126_s6, 256  ;;  %s783_s19 = scalar_lea.hbm %s1173_s2, 512 }
 0x258   : > { %p780_p9 = scmp.ne.s32.totalorder %s1126_s6, %s779_s14  ;;  %p784_p4 = scmp.lt.s32.totalorder %s1126_s6, %s1173_s2 }
 0x259   : > { %p785_p7 = scmp.lt.s32.totalorder %s783_s19, %s779_s14 }
 0x25a   : > { %p781_p11 = pnand %p780_p9, %p1185_p2 }
 0x25b   : > { %p786_p6 = por %p785_p7, %p784_p4 }
 0x25c   : > { %p782_p0 = pneg %p781_p11 }
 0x25e   : > { %p787_p13 = pnand %p786_p6, %p782_p0 }
 0x260   : > { %790 = shalt.err (!%p787_p13)
}
 0x261   : > { %s868_s4 = smov 128   ;;  %s869_s25 = smov 256  }
 0x262   : > { %s870_s26 = smov 8  }
 0x263   : > { %601 = dma.vmem_to_hbm [thread:$0]  (%p1185_p2), %s1121_s27, 256, %s1126_s6, %s474_s8, %s868_s4, %s869_s25, %s870_s26  }
 0x264 PF: > { %s501_s29 = sand.u32 1, %s821_s9   ;;  %p1186_p12 = scmp.ne.s32.totalorder %s1179_s22, 0 }
 0x265   : > { %p1187_p8 = scmp.ge.s32.totalorder %s833_s12, 2  ;;  %s502_s23 = scalar_lea.sflag [#allocation4], %s501_s29 }
 0x267   : > { %p611_p10 = pnand %p1187_p8, %p1186_p12 }
 0x269   : > { %p612_p1 = pneg %p611_p10 }
 0x26b   : > { %816 = dma.done.wait (%p612_p1), %s502_s23, 256  }
 0x26c   : > { %818 = vsyncadd (%p612_p1), %s502_s23, 4294967040  ;;  %p18_p3 = scmp.ge.s32.totalorder %s911_s15, 4   ;;  %s1188_s9 = smov %s825_s10 }
 0x26d   : > { %s1189_s10 = smov %s829_s11  ;;  %s1190_s11 = smov %s923_s18 }
 0x26e   : > { %s1191_s12 = smov %s911_s15  ;;  %20 = sbr.rel (!%p18_p3) target bundleno = 7 (0x7), region = 86 }
 0x273   :  { %507 = vsyncpa [#allocation3], 1 }
 0x274   :  { %509 = vsyncpa [#allocation3 + $0x1], 1 }
 0x275   :  { %510 = vsyncpa [#allocation6], 1 }
 0x276   :  { %512 = vsyncpa [#allocation6 + $0x1], 1 }
 0x277   :  { %513 = vsyncpa [#allocation4], 1 }
 0x278   :  { %515 = vsyncpa [#allocation4 + $0x1], 1 }

</bundles_post_ra>
